<compile_context>
chip_gen: v5e
topology: v5e:2x2
jax: 0.10.0
libtpu: 0.0.40
codegen_flags: <defaults>
</compile_context>

<pallas_src>
import functools
import math

import jax
import jax.numpy as jnp
from jax import lax
from jax.experimental import pallas as pl
from jax.experimental.pallas import tpu as pltpu


def _compute_freqs_base(head_dim: int) -> jnp.ndarray:
    """Matches rotary._compute_freqs_base (mel-scaled frequencies)."""
    half = head_dim // 2
    upper = 2595.0 * math.log10(1.0 + 4000.0 / 200.0)
    lin = jnp.linspace(0.0, upper, half, dtype=jnp.float32)
    mel_scale = jnp.power(10.0, lin / 2595.0) - 1.0
    return 200.0 * mel_scale / 1000.0


def _rotary_kernel(x_ref, cos_ref, sin_ref, o_ref, *, head_dim: int):
    # x_ref/o_ref: (rows_tile, lane_tile); cos/sin: (1, lane_tile) f32.
    #   out[l] = x[l]*cos[l] + partner[l]*sin_signed[l]
    # partner[l] = x[l+1] on even channels (real part), x[l-1] on odd (imag);
    # sin_signed = -sin on real lanes, +sin on imag lanes, 0 on pass-through,
    # so the roll wrap at tile edges is always multiplied by exactly 0.
    x_raw = x_ref[...]
    n = x_raw.shape[-1]
    # Roll the packed input (halves XLU pushes for sub-32-bit dtypes).
    x_next = pltpu.roll(x_raw, shift=n - 1, axis=1)  # x[(l+1) % n] at lane l
    x_prev = pltpu.roll(x_raw, shift=1, axis=1)      # x[(l-1) % n] at lane l
    lane = lax.broadcasted_iota(jnp.int32, (1, n), 1)
    even = (lane % head_dim) % 2 == 0                # channel parity mask
    partner = jnp.where(even, x_next, x_prev).astype(jnp.float32)
    out = x_raw.astype(jnp.float32) * cos_ref[...] + partner * sin_ref[...]
    o_ref[...] = out.astype(o_ref.dtype)


def _hw_block_budget():
    """(block_budget_bytes, vmem_limit_bytes | None), per TPU generation."""
    try:
        vmem = int(pltpu.get_tpu_info().vmem_capacity_bytes)
    except Exception:
        return 2 << 20, None                 # unknown / emulated: stay small
    if vmem <= (64 << 20):                   # v7x-class: 64 MiB VMEM, 3.2 TB/s
        return 8 << 20, 48 << 20
    return 4 << 20, 32 << 20                 # v5e/v6e-class: 128 MiB VMEM


def _choose_tiles(rows: int, L: int, D: int, budget: int, itemsize: int):
    """Pick (rows_tile, lane_tile).

    lane_tile is always a multiple of D (so pair boundaries never straddle a
    roll wrap); preferably a multiple of lcm(D, 128) dividing L (lane-dense,
    unmasked); otherwise a multiple of D with a masked last tile (pl.cdiv
    grid), never blowing past the block budget.
    """
    sub = 8 * max(1, 4 // max(1, itemsize))      # sublane-dense rows multiple
    max_lane = max(D, budget // (sub * 4))
    if L <= max_lane:
        lane_tile = L
    else:
        step = (D * 128) // math.gcd(D, 128)     # lcm(D, 128)
        lane_tile = 0
        cand = (max_lane // step) * step
        while cand >= step:
            if L % cand == 0:
                lane_tile = cand
                break
            cand -= step
        if lane_tile == 0:
            # No lcm(D,128) multiple divides L: masked last lane tile instead
            # of exceeding the budget.  Still a multiple of D (wrap safety).
            lane_tile = max(D, (max_lane // D) * D)
    max_rows = max(sub, budget // (lane_tile * 4))
    rows_tile = rows if rows <= max_rows else (max_rows // sub) * sub
    # Give both v7x TensorCores work: keep >= 2 grid steps when possible.
    if pl.cdiv(rows, rows_tile) * pl.cdiv(L, lane_tile) < 2:
        if rows_tile >= 2 * sub:
            rows_tile //= 2
        elif lane_tile >= 2 * D and lane_tile % (2 * D) == 0:
            lane_tile //= 2
    return rows_tile, lane_tile


def rotary_forward(x: jnp.ndarray, theta: jnp.ndarray, freqs_base: jnp.ndarray) -> jnp.ndarray:
    """x: [B, H, S, D].  Returns same shape/dtype with rotary applied."""
    B, H, S, D = x.shape
    half = freqs_base.shape[0]
    rot = 2 * half
    rows = B * H
    L = S * D

    # --- O(S*D) coefficient tables (glue), reused by every (b, h) row -------
    theta32 = jnp.asarray(theta, jnp.float32)
    freqs = (theta32 / 220.0) * freqs_base.astype(jnp.float32)      # (half,)
    pos = jnp.arange(S, dtype=jnp.float32)
    ang = pos[:, None] * freqs[None, :]                              # (S, half)
    c = jnp.cos(ang)
    s = jnp.sin(ang)
    d_idx = jnp.arange(D)
    pair = jnp.minimum(d_idx, max(rot - 1, 0)) // 2                  # freq idx per channel
    in_rot = d_idx < rot
    is_real = in_rot & (d_idx % 2 == 0)
    is_imag = in_rot & (d_idx % 2 == 1)
    cos_t = jnp.where(in_rot[None, :], c[:, pair], 1.0)              # (S, D)
    sin_t = jnp.where(is_real[None, :], -s[:, pair],
                      jnp.where(is_imag[None, :], s[:, pair], 0.0))  # signed sin
    cos_t = cos_t.reshape(1, L)
    sin_t = sin_t.reshape(1, L)

    # Free, contiguous reshape: heads become rows, (seq, head_dim) become lanes.
    xf = x.reshape(rows, L)

    budget, vmem_limit = _hw_block_budget()
    rows_tile, lane_tile = _choose_tiles(rows, L, D, budget, x.dtype.itemsize)
    grid = (pl.cdiv(L, lane_tile), pl.cdiv(rows, rows_tile))  # rows innermost:
    # tables (indexed only by the lane axis) stay resident across the rows loop.

    cp_kwargs = dict(dimension_semantics=("parallel", "parallel"))
    if vmem_limit is not None:
        cp_kwargs["vmem_limit_bytes"] = vmem_limit

    out = pl.pallas_call(
        functools.partial(_rotary_kernel, head_dim=D),
        out_shape=jax.ShapeDtypeStruct((rows, L), x.dtype),
        grid_spec=pltpu.PrefetchScalarGridSpec(
            num_scalar_prefetch=0,
            grid=grid,
            in_specs=[
                pl.BlockSpec((rows_tile, lane_tile), lambda j, i: (i, j)),
                pl.BlockSpec((1, lane_tile), lambda j, i: (0, j)),
                pl.BlockSpec((1, lane_tile), lambda j, i: (0, j)),
            ],
            out_specs=pl.BlockSpec((rows_tile, lane_tile), lambda j, i: (i, j)),
        ),
        compiler_params=pltpu.CompilerParams(**cp_kwargs),
        input_output_aliases={0: 0},      # rotate in place on x's buffer
    )(xf, cos_t, sin_t)

    return out.reshape(B, H, S, D)


def _rotary_reference(x, theta, freqs_base):
    """Pure-JAX reference mirroring the PyTorch forward."""
    B, H, S, D = x.shape
    half = freqs_base.shape[0]
    rot = 2 * half
    freqs = jnp.asarray(theta, jnp.float32) / 220.0 * freqs_base.astype(jnp.float32)
    pos = jnp.arange(S, dtype=jnp.float32)
    ang = pos[:, None] * freqs                      # (S, half)
    c, s = jnp.cos(ang), jnp.sin(ang)
    x1 = x[..., :rot].astype(jnp.float32).reshape(B, H, S, half, 2)
    xr, xi = x1[..., 0], x1[..., 1]
    orr = xr * c - xi * s
    oii = xr * s + xi * c
    x1_out = jnp.stack([orr, oii], axis=-1).reshape(B, H, S, rot).astype(x.dtype)
    return jnp.concatenate([x1_out, x[..., rot:]], axis=-1)


if __name__ == "__main__":
    # Module config: dims=128, head=4 -> head_dim=32, half=16
    dims, head = 128, 4
    head_dim = dims // head
    B, S = 2, 8

    key = jax.random.PRNGKey(0)
    x = jax.random.normal(key, (B, head, S, head_dim), dtype=jnp.float32)

    # Deterministic parameter init (matches nn.Parameter(torch.tensor(10000.)))
    theta = jnp.float32(10000.0)
    freqs_base = _compute_freqs_base(head_dim)

    out = jax.jit(rotary_forward)(x, theta, freqs_base)
    out = jax.block_until_ready(out)

    ref = _rotary_reference(x, theta, freqs_base)
    assert out.shape == x.shape and out.dtype == x.dtype
    assert jnp.allclose(out, ref, atol=1e-5, rtol=1e-5)

    print("KERNEL_OK")
</pallas_src>

<mosaic_0001>
module attributes {stable_mosaic.version = 11 : i64} {
  func.func @_rotary_kernel(%arg0: i32, %arg1: i32, %arg2: memref<8x128xf32, #tpu.memory_space<vmem>>, %arg3: memref<1x128xf32, #tpu.memory_space<vmem>>, %arg4: memref<1x128xf32, #tpu.memory_space<vmem>>, %arg5: memref<8x128xf32, #tpu.memory_space<vmem>>) attributes {dimension_semantics = [#tpu.dimension_semantics<parallel>, #tpu.dimension_semantics<parallel>], iteration_bounds = array<i64: 2, 1>, scalar_prefetch = 0 : i64, scratch_operands = 0 : i64, tpu.core_type = #tpu.core_type<tc>, window_params = [{transform_indices = @transform_0, window_bounds = array<i64: 8, 128>}, {transform_indices = @transform_1, window_bounds = array<i64: 1, 128>}, {transform_indices = @transform_2, window_bounds = array<i64: 1, 128>}, {transform_indices = @transform_3, window_bounds = array<i64: 8, 128>}]} {
    %c0 = arith.constant 0 : index
    %c0_0 = arith.constant 0 : index
    %0 = vector.load %arg2[%c0, %c0_0] : memref<8x128xf32, #tpu.memory_space<vmem>>, vector<8x128xf32>
    %c127_i32 = arith.constant 127 : i32
    %1 = tpu.dynamic_rotate %0 by %c127_i32 dim 1 : vector<8x128xf32>, i32 -> vector<8x128xf32>
    %c1_i32 = arith.constant 1 : i32
    %2 = tpu.dynamic_rotate %0 by %c1_i32 dim 1 : vector<8x128xf32>, i32 -> vector<8x128xf32>
    %3 = tpu.iota {dimensions = array<i32: 1>} : vector<1x128xi32>
    %c32_i32 = arith.constant 32 : i32
    %c0_i32 = arith.constant 0 : i32
    %4 = arith.cmpi eq, %c32_i32, %c0_i32 : i32
    %c1_i32_1 = arith.constant 1 : i32
    %5 = arith.select %4, %c1_i32_1, %c32_i32 : i32
    %6 = vector.broadcast %5 : i32 to vector<1x128xi32>
    %7 = arith.remsi %3, %6 : vector<1x128xi32>
    %c0_i32_2 = arith.constant 0 : i32
    %8 = vector.broadcast %c0_i32_2 : i32 to vector<1x128xi32>
    %9 = arith.cmpi ne, %7, %8 : vector<1x128xi32>
    %c0_i32_3 = arith.constant 0 : i32
    %10 = vector.broadcast %c0_i32_3 : i32 to vector<1x128xi32>
    %11 = arith.cmpi slt, %7, %10 : vector<1x128xi32>
    %c0_i32_4 = arith.constant 0 : i32
    %12 = arith.cmpi slt, %5, %c0_i32_4 : i32
    %13 = vector.broadcast %12 : i1 to vector<1x128xi1>
    %14 = vector.broadcast %13 : vector<1x128xi1> to vector<1x128xi1>
    %15 = arith.xori %11, %14 : vector<1x128xi1>
    %16 = arith.andi %15, %9 : vector<1x128xi1>
    %17 = vector.broadcast %5 : i32 to vector<1x128xi32>
    %18 = arith.addi %7, %17 : vector<1x128xi32>
    %19 = arith.select %16, %18, %7 : vector<1x128xi1>, vector<1x128xi32>
    %c2_i32 = arith.constant 2 : i32
    %c0_i32_5 = arith.constant 0 : i32
    %20 = arith.cmpi eq, %c2_i32, %c0_i32_5 : i32
    %c1_i32_6 = arith.constant 1 : i32
    %21 = arith.select %20, %c1_i32_6, %c2_i32 : i32
    %22 = vector.broadcast %21 : i32 to vector<1x128xi32>
    %23 = arith.remsi %19, %22 : vector<1x128xi32>
    %c0_i32_7 = arith.constant 0 : i32
    %24 = vector.broadcast %c0_i32_7 : i32 to vector<1x128xi32>
    %25 = arith.cmpi ne, %23, %24 : vector<1x128xi32>
    %c0_i32_8 = arith.constant 0 : i32
    %26 = vector.broadcast %c0_i32_8 : i32 to vector<1x128xi32>
    %27 = arith.cmpi slt, %23, %26 : vector<1x128xi32>
    %c0_i32_9 = arith.constant 0 : i32
    %28 = arith.cmpi slt, %21, %c0_i32_9 : i32
    %29 = vector.broadcast %28 : i1 to vector<1x128xi1>
    %30 = vector.broadcast %29 : vector<1x128xi1> to vector<1x128xi1>
    %31 = arith.xori %27, %30 : vector<1x128xi1>
    %32 = arith.andi %31, %25 : vector<1x128xi1>
    %33 = vector.broadcast %21 : i32 to vector<1x128xi32>
    %34 = arith.addi %23, %33 : vector<1x128xi32>
    %35 = arith.select %32, %34, %23 : vector<1x128xi1>, vector<1x128xi32>
    %c0_i32_10 = arith.constant 0 : i32
    %36 = vector.broadcast %c0_i32_10 : i32 to vector<1x128xi32>
    %37 = arith.cmpi eq, %35, %36 : vector<1x128xi32>
    %38 = vector.shape_cast %37 : vector<1x128xi1> to vector<1x128xi1>
    %39 = vector.broadcast %38 : vector<1x128xi1> to vector<8x128xi1>
    %40 = arith.select %39, %1, %2 : vector<8x128xi1>, vector<8x128xf32>
    %c0_11 = arith.constant 0 : index
    %c0_12 = arith.constant 0 : index
    %41 = vector.load %arg3[%c0_11, %c0_12] : memref<1x128xf32, #tpu.memory_space<vmem>>, vector<1x128xf32>
    %42 = vector.broadcast %41 : vector<1x128xf32> to vector<8x128xf32>
    %43 = arith.mulf %0, %42 : vector<8x128xf32>
    %c0_13 = arith.constant 0 : index
    %c0_14 = arith.constant 0 : index
    %44 = vector.load %arg4[%c0_13, %c0_14] : memref<1x128xf32, #tpu.memory_space<vmem>>, vector<1x128xf32>
    %45 = vector.broadcast %44 : vector<1x128xf32> to vector<8x128xf32>
    %46 = arith.mulf %40, %45 : vector<8x128xf32>
    %47 = arith.addf %43, %46 : vector<8x128xf32>
    %c0_15 = arith.constant 0 : index
    %c0_16 = arith.constant 0 : index
    %48 = vector.load %arg5[%c0_15, %c0_16] : memref<8x128xf32, #tpu.memory_space<vmem>>, vector<8x128xf32>
    tpu.vector_store %arg5[%c0_15, %c0_16], %47 {strides = array<i32>} : memref<8x128xf32, #tpu.memory_space<vmem>>, vector<8x128xf32>,
    return
  }
  func.func @transform_0(%arg0: i32, %arg1: i32) -> (i32, i32) {
    %c0_i32 = arith.constant 0 : i32
    return %arg1, %arg0 : i32, i32
  }
  func.func @transform_1(%arg0: i32, %arg1: i32) -> (i32, i32) {
    %c0_i32 = arith.constant 0 : i32
    %c0_i32_0 = arith.constant 0 : i32
    return %c0_i32, %arg0 : i32, i32
  }
  func.func @transform_2(%arg0: i32, %arg1: i32) -> (i32, i32) {
    %c0_i32 = arith.constant 0 : i32
    %c0_i32_0 = arith.constant 0 : i32
    return %c0_i32, %arg0 : i32, i32
  }
  func.func @transform_3(%arg0: i32, %arg1: i32) -> (i32, i32) {
    %c0_i32 = arith.constant 0 : i32
    return %arg1, %arg0 : i32, i32
  }
}

</mosaic_0001>

<bundles_post_ra>
// kernel: rotary_forward.1
= control target key start
LH: loop header
LB: loop body
LE: loop exit
PB: predicated region body
PF: predicated region fallthrough
CT: control target
= control target key end

     0   :  { %s461_s12 = smov 0   ;;  %s463_s13 = smov 0   ;;  %s500_s0 = inlined_call_operand.vmem [shape: f32[8,256], index: 0, kind: input, shape index: {}, may-alias: {0,3}]   ;;  %s501_s1 = inlined_call_operand.vmem [shape: f32[1,256], index: 1, kind: input, shape index: {}]   ;;  %s502_s2 = inlined_call_operand.vmem [shape: f32[1,256], index: 2, kind: input, shape index: {}]   ;;  %s503_s3 = inlined_call_operand.vmem [shape: f32[8,256], index: 3, kind: output, shape index: {}, may-alias: {0,3}]  }
   0x1   :  { %s465_s14 = smov 0  }
   0x2 LB: > { %s25_s15 = sadd.s32 1, %s433_s13  ;;  %p382_p0 = scmp.ge.s32.totalorder %s437_s14, 1  ;;  %s437_s14 = sphi %s465_s14, %s13_s14   ;;  %s433_s13 = sphi %s463_s13, %s505_s13   ;;  %s429_s12 = sphi %s461_s12, %s504_s12  }
   0x3   : > { %p27_p1 = scmp.ge.s32.totalorder %s25_s15, 2  ;;  %p172_p2 = scmp.lt.s32.totalorder %s437_s14, 3 }
   0x5   : > { %s507_s15 = smov (%p27_p1, %s25_s15), 0  ;;  %p173_p3 = pnand %p382_p0, %p172_p2 }
   0x6   : > { %p210_p4 = scmp.lt.s32.totalorder (!%p173_p3), %s429_s12, 1  ;;  %s439_s26 = smov (!%p173_p3), 127  }
   0x7   : > { %176 = sbr.rel (%p173_p3) target bundleno = 145 (0x91), region = 32  ;;  %s440_s27 = smov (!%p173_p3), 1  }
   0xc   : > { %s509_s12 = smov (!%p210_p4, %s429_s12), 1  ;;  %v235_v1 = vlaneseq }
   0xd   : > { %s383_s16 = sshll.u32 %s509_s12, 3  ;;  %s218_s19 = scalar_lea.vmem %s501_s1, %s509_s12 }
   0xe   : > { %s215_s22 = scalar_lea.vmem %s500_s0, %s383_s16  ;;  %s221_s25 = scalar_lea.vmem %s502_s2, %s509_s12  ;;  %v236_v2 = vand.u32 127, %v235_v1  ;;  %v413_v6 = vld [vmem:[%s218_s19] ss:$0 sm:$0xff] }
   0xf   : > { %v230_v0 = vld [vmem:[%s215_s22] sm:$0xff]  ;;  %s229_s30 = scalar_lea.vmem %s503_s3, %s383_s16 }
  0x10   : > { %231 = vrot.lane.b32.xlu0 %v230_v0, %s439_s26  ;;  %v241_v3 = vand.u32 31, %v236_v2  ;;  %v414_v7 = vld [vmem:[%s221_s25] ss:$0 sm:$0xff]  ;;  %v269_v9 = vmul.f32 %v413_v6, %v230_v0 }
  0x12   : > { %v253_v5 = vand.u32 1, %v241_v3 }
  0x14   : > { %vm261_vm0 = vcmp.eq.s32.totalorder %v253_v5, 0 }
  0x18   : > { %233 = vrot.lane.b32.xlu0 %v230_v0, %s440_s27 }
  0x82   : > { %v232_v4 = vpop.permute.xlu0 %231 }
  0x8a   : > { %v234_v8 = vpop.permute.xlu0 %233 }
  0x8b   : > { %v264_v10 = vsel %vm261_vm0, %v232_v4, %v234_v8 }
  0x8c   : > { %v274_v11 = vmul.f32 %v414_v7, %v264_v10 }
  0x8e   : > { %v275_v12 = vadd.f32 %v274_v11, %v269_v9 }
  0x90   : > { %276 = vst [vmem:[%s229_s30] sm:$0xff] %v275_v12 }
  0x91 PF: > { %s13_s14 = sadd.s32 1, %s437_s14   ;;  %s504_s12 = smov %s433_s13 }
  0x92   : > { %p10_p5 = scmp.ge.s32.totalorder %s13_s14, 4   ;;  %s505_s13 = smov %s507_s15 }
  0x94   :  { %12 = sbr.rel (!%p10_p5) target bundleno = 2 (0x2), region = 68 }

</bundles_post_ra>
